<compile_context>
chip_gen: v6e
topology: v6e:2x2x1
jax: 0.10.0
libtpu: 0.0.40
codegen_flags: <defaults>
</compile_context>

<pallas_src>
import functools
import warnings

import jax
import jax.numpy as jnp
from jax import lax
from jax.experimental import pallas as pl
from jax.experimental.pallas import tpu as pltpu


_WHOLE_ARRAY_VMEM_BUDGET = 8 * 1024 * 1024   # gridless if real+fake+out fit under this
_TARGET_BLOCK_BYTES = 2 * 1024 * 1024        # per-array block size for the gridded path


def _mix_rows_kernel(real_ref, fake_ref, out_ref, *, num_layers, layer_start,
                     layer_end, block_rows):
    """Rows whose (row % num_layers) lies in [layer_start, layer_end) come from
    the fake (trainable NN) code; all other rows come from the real code."""
    # block_rows is a static Python value: None => gridless whole-array call.
    base = pl.program_id(0) * block_rows if block_rows is not None else 0
    row = base + lax.broadcasted_iota(jnp.int32, out_ref.shape, 0)
    layer = row % num_layers
    use_fake = jnp.logical_and(layer >= layer_start, layer < layer_end)
    # Single full-block select: one unmasked store per vreg, VPU-only, no
    # cross-sublane movement at the non-8-aligned split points.
    out_ref[...] = jnp.where(use_fake, fake_ref[...], real_ref[...])


def latent_code_forward(latent_code_real, latent_code_fake_nn,
                        layer_start=3, layer_end=8, *,
                        donate_real=False, block_rows=None):
    """Pallas implementation of LatentCode.forward() for latent_space='W+'.

    Equivalent to torch.cat([real[:, :ls], fake[:, ls:le], real[:, le:]], 1).

    donate_real: set True ONLY when the caller donates latent_code_real
      (jax.jit(..., donate_argnums=(0,))); then the output aliases / reuses
      its HBM buffer.  With no donation the alias would force a defensive
      copy, so it is off by default.
    block_rows: force the gridded path with this row-block size (testing /
      tuning); None = auto (gridless when small, VMEM-budgeted block when big).
    """
    assert latent_code_real.shape == latent_code_fake_nn.shape
    assert latent_code_real.dtype == latent_code_fake_nn.dtype
    B, L, D = latent_code_real.shape
    ls, le = int(layer_start), int(layer_end)
    assert 0 <= ls < le <= L, (ls, le, L)

    rows = B * L
    dtype = latent_code_real.dtype
    itemsize = jnp.dtype(dtype).itemsize

    # Flatten (B, L, D) -> (B*L, D): pure bitcast at the production B=1 size,
    # fewer padded sublanes and a lane-dense 2-D output slab in general.
    real2d = latent_code_real.reshape(rows, D)
    fake2d = latent_code_fake_nn.reshape(rows, D)

    # Alias only when the caller actually donates the real code.
    aliases = {0: 0} if donate_real else {}

    if block_rows is None and 3 * rows * D * itemsize <= _WHOLE_ARRAY_VMEM_BUDGET:
        # Production W+ case: single shot, whole arrays resident in VMEM,
        # no grid / per-step pipeline overhead.
        kernel = functools.partial(
            _mix_rows_kernel, num_layers=L, layer_start=ls, layer_end=le,
            block_rows=None)
        out2d = pl.pallas_call(
            kernel,
            out_shape=jax.ShapeDtypeStruct((rows, D), dtype),
            in_specs=[pl.BlockSpec(memory_space=pltpu.MemorySpace.VMEM)] * 2,
            out_specs=pl.BlockSpec(memory_space=pltpu.MemorySpace.VMEM),
            input_output_aliases=aliases,
        )(real2d, fake2d)
    else:
        # Batched path: 1-D "parallel" grid over rows (second TC on v7x).
        if block_rows is None:
            bm = (_TARGET_BLOCK_BYTES // (D * itemsize)) // 8 * 8
            block_rows = int(max(8, min(rows, bm)))
        block_rows = int(block_rows)
        # (8,128) rule: second-minor block dim multiple of 8 or full extent.
        assert block_rows % 8 == 0 or block_rows == rows, block_rows

        kernel = functools.partial(
            _mix_rows_kernel, num_layers=L, layer_start=ls, layer_end=le,
            block_rows=block_rows)
        spec = pl.BlockSpec((block_rows, D), lambda i: (i, 0))
        out2d = pl.pallas_call(
            kernel,
            out_shape=jax.ShapeDtypeStruct((rows, D), dtype),
            grid=(pl.cdiv(rows, block_rows),),
            in_specs=[spec, spec],
            out_specs=spec,
            input_output_aliases=aliases,
            compiler_params=pltpu.CompilerParams(
                dimension_semantics=("parallel",)),
        )(real2d, fake2d)

    return out2d.reshape(B, L, D)


if __name__ == "__main__":
    # Deterministic synthetic latent codes (stand-in for e4e inversion / NN
    # code).  StyleGAN2 W+ is (1, 18, 512); we use a small-but-consistent
    # (B=2, L=18, D=128) so L >= layer_end=8 and D is lane-aligned.
    key = jax.random.PRNGKey(0)
    k_real, k_fake = jax.random.split(key)
    B, L, D = 2, 18, 128
    latent_code_real = jax.random.normal(k_real, (B, L, D), dtype=jnp.float32)
    latent_code_fake_nn = jax.random.normal(k_fake, (B, L, D), dtype=jnp.float32)

    # Reference: torch.cat([real[:, :3], fake[:, 3:8], real[:, 8:]], dim=1)
    ref = jnp.concatenate(
        [latent_code_real[:, :3, :],
         latent_code_fake_nn[:, 3:8, :],
         latent_code_real[:, 8:, :]],
        axis=1,
    )

    # 1) Default path: gridless, no alias (caller keeps the real code alive).
    out = jax.block_until_ready(
        latent_code_forward(latent_code_real, latent_code_fake_nn))
    assert out.shape == (B, L, D)
    assert out.dtype == latent_code_real.dtype
    assert jnp.array_equal(out, ref)

    # 2) Donated / in-place path at the production batch size (B=1): the alias
    #    is enabled only because the caller actually hands over the buffer.
    real_1 = latent_code_real[:1]
    fake_1 = latent_code_fake_nn[:1]
    ref_1 = ref[:1]
    donated_mix = jax.jit(
        functools.partial(latent_code_forward, donate_real=True),
        donate_argnums=(0,))
    with warnings.catch_warnings():
        # If XLA cannot thread the donation through it falls back to a copy
        # and warns; benign for this correctness check.
        warnings.simplefilter("ignore")
        real_donor = real_1 + 0.0          # fresh buffer we are allowed to give away
        out_donated = jax.block_until_ready(donated_mix(real_donor, fake_1))
    assert jnp.array_equal(out_donated, ref_1)

    # 3) Batched / gridded path, exercised at small shape by forcing a block
    #    size (auto-selected only once the arrays no longer fit VMEM easily).
    out_grid = jax.block_until_ready(
        latent_code_forward(latent_code_real, latent_code_fake_nn,
                            block_rows=16))
    assert jnp.array_equal(out_grid, ref)

    # TODO(synk): do_optim()/save() are filesystem-side-effect methods
    # (torch.save / path checks) with no Pallas equivalent; only forward()
    # is implemented.
    print("KERNEL_OK")
</pallas_src>

<mosaic_0001>
module attributes {stable_mosaic.version = 11 : i64} {
  func.func @_mix_rows_kernel(%arg0: memref<36x128xf32, #tpu.memory_space<vmem>>, %arg1: memref<36x128xf32, #tpu.memory_space<vmem>>, %arg2: memref<36x128xf32, #tpu.memory_space<vmem>>) attributes {dimension_semantics = [], scalar_prefetch = 0 : i64, scratch_operands = 0 : i64, tpu.core_type = #tpu.core_type<tc>} {
    %0 = tpu.iota {dimensions = array<i32: 0>} : vector<36x128xi32>
    %c0_i32 = arith.constant 0 : i32
    %1 = vector.broadcast %c0_i32 : i32 to vector<36x128xi32>
    %2 = arith.addi %1, %0 : vector<36x128xi32>
    %c18_i32 = arith.constant 18 : i32
    %c0_i32_0 = arith.constant 0 : i32
    %3 = arith.cmpi eq, %c18_i32, %c0_i32_0 : i32
    %c1_i32 = arith.constant 1 : i32
    %4 = arith.select %3, %c1_i32, %c18_i32 : i32
    %5 = vector.broadcast %4 : i32 to vector<36x128xi32>
    %6 = arith.remsi %2, %5 : vector<36x128xi32>
    %c0_i32_1 = arith.constant 0 : i32
    %7 = vector.broadcast %c0_i32_1 : i32 to vector<36x128xi32>
    %8 = arith.cmpi ne, %6, %7 : vector<36x128xi32>
    %c0_i32_2 = arith.constant 0 : i32
    %9 = vector.broadcast %c0_i32_2 : i32 to vector<36x128xi32>
    %10 = arith.cmpi slt, %6, %9 : vector<36x128xi32>
    %c0_i32_3 = arith.constant 0 : i32
    %11 = arith.cmpi slt, %4, %c0_i32_3 : i32
    %12 = vector.broadcast %11 : i1 to vector<36x128xi1>
    %13 = vector.broadcast %12 : vector<36x128xi1> to vector<36x128xi1>
    %14 = arith.xori %10, %13 : vector<36x128xi1>
    %15 = arith.andi %14, %8 : vector<36x128xi1>
    %16 = vector.broadcast %4 : i32 to vector<36x128xi32>
    %17 = arith.addi %6, %16 : vector<36x128xi32>
    %18 = arith.select %15, %17, %6 : vector<36x128xi1>, vector<36x128xi32>
    %c3_i32 = arith.constant 3 : i32
    %19 = vector.broadcast %c3_i32 : i32 to vector<36x128xi32>
    %20 = arith.cmpi sge, %18, %19 : vector<36x128xi32>
    %c8_i32 = arith.constant 8 : i32
    %21 = vector.broadcast %c8_i32 : i32 to vector<36x128xi32>
    %22 = arith.cmpi slt, %18, %21 : vector<36x128xi32>
    %23 = arith.andi %20, %22 : vector<36x128xi1>
    %c0 = arith.constant 0 : index
    %c0_4 = arith.constant 0 : index
    %24 = vector.load %arg1[%c0, %c0_4] : memref<36x128xf32, #tpu.memory_space<vmem>>, vector<36x128xf32>
    %c0_5 = arith.constant 0 : index
    %c0_6 = arith.constant 0 : index
    %25 = vector.load %arg0[%c0_5, %c0_6] : memref<36x128xf32, #tpu.memory_space<vmem>>, vector<36x128xf32>
    %26 = arith.select %23, %24, %25 : vector<36x128xi1>, vector<36x128xf32>
    %c0_7 = arith.constant 0 : index
    %c0_8 = arith.constant 0 : index
    %27 = vector.load %arg2[%c0_7, %c0_8] : memref<36x128xf32, #tpu.memory_space<vmem>>, vector<36x128xf32>
    tpu.vector_store %arg2[%c0_7, %c0_8], %26 {strides = array<i32>} : memref<36x128xf32, #tpu.memory_space<vmem>>, vector<36x128xf32>,
    return
  }
}

</mosaic_0001>

<bundles_post_ra>
// kernel: tpu_custom_call.1
= control target key start
LH: loop header
LB: loop body
LE: loop exit
PB: predicated region body
PF: predicated region fallthrough
CT: control target
= control target key end

     0   :  { %7 = vsyncpa [#allocation3], 0  ;;  %s320_s0 = inlined_call_operand.hbm [shape: f32[36,128], index: 0, kind: input, shape index: {}]   ;;  %s321_s1 = inlined_call_operand.hbm [shape: f32[36,128], index: 1, kind: input, shape index: {}]   ;;  %s322_s2 = inlined_call_operand.hbm [shape: f32[36,128], index: 2, kind: output, shape index: {}]  }
   0x1   :  { %8 = vsyncpa [#allocation6], 0 }
   0x2   :  { %9 = vsyncpa [#allocation4], 0  ;;  %s260_s9 = smov [#allocation2]  }
   0x3   :  { %s15_s10 = sshll.u32 %s260_s9, 4  ;;  %s16_s10 = int_to_ptr.vmem [resolvable:$true] %s15_s10 }
   0x4   :  { %s202_s11 = scalar_lea.vmem %s16_s10, 640  ;;  %p207_p1 = scmp.lt.s32.totalorder %s16_s10, %s16_s10 }
   0x5   :  { %p203_p0 = scmp.ne.s32.totalorder %s16_s10, %s202_s11  ;;  %p208_p2 = scmp.lt.s32.totalorder %s202_s11, %s202_s11 }
   0x7   :  { %p209_p3 = por %p208_p2, %p207_p1 }
   0x9   :  { %p210_p4 = pnand %p209_p3, %p203_p0 }
   0xb   :  { %213 = shalt.err (!%p210_p4)
}
   0xc   :  { %s261_s12 = smov 128   ;;  %s262_s13 = smov 8  }
   0xd   :  { %21 = dma.hbm_to_vmem [thread:$0]  %s320_s0, 640, %s16_s10, [#allocation3], %s261_s12, %s261_s12, %s262_s13  }
   0xe   :  { %s263_s16 = smov [#allocation5]  }
   0xf   :  { %s27_s17 = sshll.u32 %s263_s16, 4  ;;  %s28_s17 = int_to_ptr.vmem [resolvable:$true] %s27_s17 }
  0x10   :  { %s222_s18 = scalar_lea.vmem %s28_s17, 640  ;;  %p227_p6 = scmp.lt.s32.totalorder %s28_s17, %s28_s17 }
  0x11   :  { %p223_p5 = scmp.ne.s32.totalorder %s28_s17, %s222_s18  ;;  %p228_p7 = scmp.lt.s32.totalorder %s222_s18, %s222_s18 }
  0x13   :  { %p229_p8 = por %p228_p7, %p227_p6 }
  0x15   :  { %p230_p9 = pnand %p229_p8, %p223_p5 }
  0x17   :  { %233 = shalt.err (!%p230_p9)
}
  0x18   :  { %33 = dma.hbm_to_vmem [thread:$0]  %s321_s1, 640, %s28_s17, [#allocation6], %s261_s12, %s261_s12, %s262_s13  }
  0x19   :  { %254 = dma.done.wait [#allocation3], 640  }
  0x1a   :  { %255 = vsyncadd [#allocation3], 4294966656 }
  0x1b   :  { %256 = dma.done.wait [#allocation6], 640  }
  0x1c   :  { %257 = vsyncadd [#allocation6], 4294966656  ;;  %v40_v0 = vlaneseq  ;;  %v141_v32 = vld [vmem:[#allocation5] sm:$0xff]  ;;  %v146_v33 = vld [vmem:[#allocation2] sm:$0xff]  ;;  %s264_s0 = smov [#allocation7]  }
  0x1d   :  { %v142_v36 = vld [vmem:[#allocation5 + $0x8] sm:$0xff]  ;;  %v147_v37 = vld [vmem:[#allocation2 + $0x8] sm:$0xff]  ;;  %v143_v42 = vld [vmem:[#allocation5 + $0x10] sm:$0xff]  ;;  %s166_s1 = sshll.u32 %s264_s0, 4  ;;  %s167_s1 = int_to_ptr.vmem [resolvable:$true] %s166_s1 }
  0x1e   :  { %v41_v1 = vshrl.u32 %v40_v0, 7  ;;  %v148_v43 = vld [vmem:[#allocation2 + $0x10] sm:$0xff]  ;;  %v144_v47 = vld [vmem:[#allocation5 + $0x18] sm:$0xff]  ;;  %v149_v48 = vld [vmem:[#allocation2 + $0x18] sm:$0xff]  ;;  %s234_s21 = scalar_lea.vmem %s167_s1, 640  ;;  %p239_p11 = scmp.lt.s32.totalorder %s167_s1, %s167_s1 }
  0x1f   :  { %v145_v52 = vld [vmem:[#allocation5 + $0x20] sm:$0xf]  ;;  %v150_v53 = vld [vmem:[#allocation2 + $0x20] sm:$0xf]  ;;  %p235_p10 = scmp.ne.s32.totalorder %s167_s1, %s234_s21  ;;  %p240_p12 = scmp.lt.s32.totalorder %s234_s21, %s234_s21 }
  0x20   :  { %v292_v2 = vmul.u32.u64.low 3817748708, %v41_v1  ;;  %v293_v3 = vmul.u32.u64.high 3817748708, %v41_v1, %v292_v2  ;;  %v42_v4 = vadd.s32 8, %v41_v1  ;;  %v43_v5 = vadd.s32 16, %v41_v1 }
  0x21   :  { %v44_v6 = vadd.s32 24, %v41_v1  ;;  %v45_v7 = vadd.s32 32, %v41_v1  ;;  %p241_p13 = por %p240_p12, %p239_p11 }
  0x22   :  { %v295_v8 = vmul.u32.u64.low 3817748708, %v42_v4  ;;  %v296_v9 = vmul.u32.u64.high 3817748708, %v42_v4, %v295_v8  ;;  %v298_v10 = vmul.u32.u64.low 3817748708, %v43_v5  ;;  %v299_v11 = vmul.u32.u64.high 3817748708, %v43_v5, %v298_v10 }
  0x23   :  { %v301_v12 = vmul.u32.u64.low 3817748708, %v44_v6  ;;  %v302_v13 = vmul.u32.u64.high 3817748708, %v44_v6, %v301_v12  ;;  %v52_v14 = vshrl.u32 %v293_v3, 4  ;;  %p242_p0 = pnand %p241_p13, %p235_p10 }
  0x24   :  { %v305_v15 = vmul.u32.u64.low 3817748708, %v45_v7  ;;  %v306_v16 = vmul.u32.u64.high 3817748708, %v45_v7, %v305_v15  ;;  %v63_v18 = vshrl.u32 %v296_v9, 4  ;;  %v74_v19 = vshrl.u32 %v299_v11, 4 }
  0x25   :  { %v53_v17 = vmul.u32 18, %v52_v14  ;;  %v85_v20 = vshrl.u32 %v302_v13, 4 }
  0x26   :  { %v64_v22 = vmul.u32 18, %v63_v18  ;;  %v75_v23 = vmul.u32 18, %v74_v19  ;;  %v96_v24 = vshrl.u32 %v306_v16, 4 }
  0x27   :  { %v54_v21 = vsub.s32 %v41_v1, %v53_v17  ;;  %v86_v25 = vmul.u32 18, %v85_v20 }
  0x28   :  { %v65_v27 = vsub.s32 %v42_v4, %v64_v22  ;;  %v76_v28 = vsub.s32 %v43_v5, %v75_v23  ;;  %v97_v30 = vmul.u32 18, %v96_v24 }
  0x29   :  { %vm101_vm0 = vcmp.ne.s32.totalorder %v54_v21, 0  ;;  %vm106_vm1 = vcmp.lt.s32.totalorder %v54_v21, 0  ;;  %v116_v26 = vadd.s32 18, %v54_v21  ;;  %v87_v29 = vsub.s32 %v44_v6, %v86_v25 }
  0x2a   :  { %vm111_vm2 = vmand %vm106_vm1, %vm101_vm0  ;;  %vm102_vm3 = vcmp.ne.s32.totalorder %v65_v27, 0  ;;  %vm107_vm4 = vcmp.lt.s32.totalorder %v65_v27, 0  ;;  %v117_v34 = vadd.s32 18, %v65_v27  ;;  %vm103_vm8 = vcmp.ne.s32.totalorder %v76_v28, 0 }
  0x2b   :  { %v121_v31 = vsel %vm111_vm2, %v116_v26, %v54_v21  ;;  %vm112_vm7 = vmand %vm107_vm4, %vm102_vm3  ;;  %vm108_vm9 = vcmp.lt.s32.totalorder %v76_v28, 0  ;;  %v118_v38 = vadd.s32 18, %v76_v28  ;;  %vm104_vm11 = vcmp.ne.s32.totalorder %v87_v29, 0 }
  0x2c   :  { %vm126_vm5 = vcmp.ge.s32.totalorder %v121_v31, 3  ;;  %vm131_vm6 = vcmp.lt.s32.totalorder %v121_v31, 8  ;;  %v122_v35 = vsel %vm112_vm7, %v117_v34, %v65_v27  ;;  %vm109_vm12 = vcmp.lt.s32.totalorder %v87_v29, 0  ;;  %vm113_vm15 = vmand %vm108_vm9, %vm103_vm8 }
  0x2d   :  { %vm136_vm10 = vmand %vm126_vm5, %vm131_vm6  ;;  %vm127_vm13 = vcmp.ge.s32.totalorder %v122_v35, 3  ;;  %vm132_vm14 = vcmp.lt.s32.totalorder %v122_v35, 8  ;;  %v119_v40 = vadd.s32 18, %v87_v29  ;;  %v123_v41 = vsel %vm113_vm15, %v118_v38, %v76_v28 }
  0x2e   :  { %v151_v39 = vsel %vm136_vm10, %v141_v32, %v146_v33  ;;  %vm137_vm0 = vmand %vm127_vm13, %vm132_vm14  ;;  %v98_v44 = vsub.s32 %v45_v7, %v97_v30  ;;  %vm128_vm1 = vcmp.ge.s32.totalorder %v123_v41, 3  ;;  %vm133_vm2 = vcmp.lt.s32.totalorder %v123_v41, 8 }
  0x2f   :  { %156 = vst [vmem:[#allocation7] sm:$0xff] %v151_v39  ;;  %v152_v45 = vsel %vm137_vm0, %v142_v36, %v147_v37  ;;  %vm114_vm3 = vmand %vm109_vm12, %vm104_vm11 }
  0x30   :  { %157 = vst [vmem:[#allocation7 + $0x8] sm:$0xff] %v152_v45  ;;  %vm138_vm4 = vmand %vm128_vm1, %vm133_vm2  ;;  %v124_v46 = vsel %vm114_vm3, %v119_v40, %v87_v29  ;;  %vm105_vm5 = vcmp.ne.s32.totalorder %v98_v44, 0  ;;  %vm110_vm6 = vcmp.lt.s32.totalorder %v98_v44, 0  ;;  %v120_v49 = vadd.s32 18, %v98_v44 }
  0x31   :  { %v153_v50 = vsel %vm138_vm4, %v143_v42, %v148_v43  ;;  %vm129_vm7 = vcmp.ge.s32.totalorder %v124_v46, 3  ;;  %vm134_vm8 = vcmp.lt.s32.totalorder %v124_v46, 8  ;;  %vm115_vm9 = vmand %vm110_vm6, %vm105_vm5 }
  0x32   :  { %158 = vst [vmem:[#allocation7 + $0x10] sm:$0xff] %v153_v50  ;;  %vm139_vm10 = vmand %vm129_vm7, %vm134_vm8  ;;  %v125_v51 = vsel %vm115_vm9, %v120_v49, %v98_v44 }
  0x33   :  { %v154_v54 = vsel %vm139_vm10, %v144_v47, %v149_v48  ;;  %vm130_vm11 = vcmp.ge.s32.totalorder %v125_v51, 3  ;;  %vm135_vm12 = vcmp.lt.s32.totalorder %v125_v51, 8 }
  0x34   :  { %159 = vst [vmem:[#allocation7 + $0x18] sm:$0xff] %v154_v54  ;;  %vm140_vm13 = vmand %vm130_vm11, %vm135_vm12 }
  0x35   :  { %v155_v55 = vsel %vm140_vm13, %v145_v52, %v150_v53 }
  0x36   :  { %160 = vst [vmem:[#allocation7 + $0x20] sm:$0xf] %v155_v55 }
  0x37   :  { %245 = shalt.err (!%p242_p0)
}
  0x38   :  { %172 = dma.vmem_to_hbm [thread:$0]  %s167_s1, 640, %s322_s2, [#allocation4], %s261_s12, %s261_s12, %s262_s13  }
  0x39   :  { %258 = dma.done.wait [#allocation4], 640  }
  0x3a   :  { %259 = vsyncadd [#allocation4], 4294966656 }
  0x3b   :  { %176 = vsyncpa [#allocation3], 1 }
  0x3c   :  { %177 = vsyncpa [#allocation6], 1 }
  0x3d   :  { %178 = vsyncpa [#allocation4], 1 }

</bundles_post_ra>
